<compile_context>
chip_gen: v6e
topology: v6e:2x2x1
jax: 0.10.0
libtpu: 0.0.40
codegen_flags: <defaults>
</compile_context>

<pallas_src>
import jax
import jax.numpy as jnp
from jax.experimental import pallas as pl
from jax.experimental.pallas import tpu as pltpu


def _round_up(x, m):
    return ((x + m - 1) // m) * m


def _make_kernel(tb, l_pad, f_pad):
    def kernel(x_ref, w_ref, b_ref, o_ref):
        # x_ref: (TB * L_pad, K*C) bf16  -- im2col windows for TB sequences
        # w_ref: (K*C, F_pad)      bf16  -- fused conv weights
        # b_ref: (1, F_pad)        f32
        # o_ref: (TB, F_pad)       f32
        # One fused MXU dot: all K taps and all TB*L_pad window positions at once,
        # accumulated in f32.
        y = jnp.dot(x_ref[...], w_ref[...], preferred_element_type=jnp.float32)
        y = y.reshape(tb, l_pad, f_pad)
        # MaxPool1d over the full valid window (padding rows are duplicates of a
        # valid window, so they never change the max).  Bias is constant over the
        # window axis, so it is added after the pool (cheaper, same result).
        pooled = jnp.max(y, axis=1) + b_ref[...]
        o_ref[...] = jnp.maximum(pooled, 0.0)  # ReLU
    return kernel


def base_filter_forward(one_hot_ncl, weight_fck, bias_f, kernel_size, max_len,
                        *, batch_tile=None):
    """BaseFilter forward.  one_hot_ncl: (B, C, L) float -> (B, F) float32."""
    B, C, L = one_hot_ncl.shape
    F = weight_fck.shape[0]
    K = kernel_size
    assert L == max_len, "kernel assumes sequence length == max_len"
    L_out = max_len - K + 1
    L_pad = _round_up(L_out, 8)      # sublane-aligned number of window positions
    F_pad = _round_up(F, 128)        # lane-dense output / full MXU N
    KC = K * C

    # ---- wrapper-side prep (plain XLA; tiny arrays) -------------------------
    # TODO(synk): upstream could pass token ids instead of a materialized (B, C, L)
    # one-hot to cut HBM traffic further; the module interface provides one-hot.
    x_blc = jnp.transpose(one_hot_ncl, (0, 2, 1)).astype(jnp.float32)   # (B, L, C)

    # im2col: windows[b, l, k*C + c] = x[b, l + k, c]  for l in [0, L_out)
    windows = jnp.stack([x_blc[:, k:k + L_out, :] for k in range(K)], axis=2)
    windows = windows.reshape(B, L_out, KC)
    if L_pad != L_out:   # repeat the last valid window -> max-pool unchanged
        tail = jnp.broadcast_to(windows[:, L_out - 1:L_out, :],
                                (B, L_pad - L_out, KC))
        windows = jnp.concatenate([windows, tail], axis=1)

    # batch tiling (TB*L_pad rows per MXU dot; multiple of 8 when B is split)
    if batch_tile is None:
        batch_tile = max(8, _round_up(max(1, 512 // L_pad), 8))
    if B <= batch_tile:
        TB, B_pad = B, B
    else:
        TB = batch_tile
        B_pad = _round_up(B, TB)
        windows = jnp.pad(windows, ((0, B_pad - B), (0, 0), (0, 0)))

    x2d = windows.reshape(B_pad * L_pad, KC).astype(jnp.bfloat16)

    # fused weight: w2[k*C + c, f] = weight[f, c, k]; zero-pad F to F_pad
    w2 = jnp.transpose(weight_fck, (2, 1, 0)).reshape(KC, F).astype(jnp.bfloat16)
    w2 = jnp.pad(w2, ((0, 0), (0, F_pad - F)))
    b1 = jnp.pad(bias_f.reshape(1, F).astype(jnp.float32),
                 ((0, 0), (0, F_pad - F)))

    kernel = _make_kernel(TB, L_pad, F_pad)
    grid = (B_pad // TB,)

    out = pl.pallas_call(
        kernel,
        out_shape=jax.ShapeDtypeStruct((B_pad, F_pad), jnp.float32),
        grid_spec=pltpu.PrefetchScalarGridSpec(
            num_scalar_prefetch=0,
            grid=grid,
            in_specs=[
                pl.BlockSpec((TB * L_pad, KC), lambda b: (b, 0)),
                pl.BlockSpec((KC, F_pad), lambda b: (0, 0)),
                pl.BlockSpec((1, F_pad), lambda b: (0, 0)),
            ],
            out_specs=pl.BlockSpec((TB, F_pad), lambda b: (b, 0)),
        ),
        compiler_params=pltpu.CompilerParams(
            dimension_semantics=("parallel",),
        ),
        cost_estimate=pl.CostEstimate(
            flops=2 * B_pad * L_pad * KC * F_pad,
            transcendentals=0,
            bytes_accessed=(x2d.size * 2 + w2.size * 2 + b1.size * 4
                            + B_pad * F_pad * 4),
        ),
    )(x2d, w2, b1)

    return out[:B, :F]


def reference_forward(one_hot_ncl, weight_fck, bias_f, kernel_size, max_len):
    """Pure-JAX f32 reference mirroring the PyTorch module."""
    B, C, L = one_hot_ncl.shape
    F = weight_fck.shape[0]
    L_out = max_len - kernel_size + 1
    y = jnp.zeros((B, F, L_out), jnp.float32)
    for k in range(kernel_size):
        y = y + jnp.einsum('bcl,fc->bfl',
                           one_hot_ncl[:, :, k:k + L_out].astype(jnp.float32),
                           weight_fck[:, :, k].astype(jnp.float32))
    y = y + bias_f[None, :, None]
    y = jnp.max(y, axis=2)          # MaxPool1d(L_out), squeezed
    y = jnp.maximum(y, 0.0)         # ReLU
    return y                        # == flatten(start_dim=1) of (B, F, 1)


if __name__ == "__main__":
    # small deterministic config
    vocab_size = 8      # in channels (one-hot alphabet size)
    kernel_size = 3
    nb_filters = 32
    max_len = 16
    batch = 2

    key = jax.random.PRNGKey(0)
    k_w, k_x = jax.random.split(key)

    # xavier_normal_ init for Conv1d weight (F, C, K); bias zeros (as in module)
    fan_in = vocab_size * kernel_size
    fan_out = nb_filters * kernel_size
    std = (2.0 / (fan_in + fan_out)) ** 0.5
    weight = jax.random.normal(k_w, (nb_filters, vocab_size, kernel_size),
                               dtype=jnp.float32) * std
    bias = jnp.zeros((nb_filters,), jnp.float32)

    # one-hot input (B, C, L) like PyTorch NCL
    ids = jax.random.randint(k_x, (batch, max_len), 0, vocab_size)
    one_hot = jax.nn.one_hot(ids, vocab_size, dtype=jnp.float32)   # (B, L, C)
    one_hot = jnp.transpose(one_hot, (0, 2, 1))                    # (B, C, L)

    out = base_filter_forward(one_hot, weight, bias, kernel_size, max_len)
    out = jax.block_until_ready(out)

    ref = reference_forward(one_hot, weight, bias, kernel_size, max_len)
    assert out.shape == (batch, nb_filters)
    # bf16 MXU operands round the weights (~1e-3 rel); inputs are exact 0/1.
    assert jnp.allclose(out, ref, atol=1e-2, rtol=1e-2)

    print("KERNEL_OK")
</pallas_src>

<mosaic_0001>
module attributes {stable_mosaic.version = 11 : i64} {
  func.func @kernel(%arg0: i32, %arg1: memref<32x24xbf16, #tpu.memory_space<vmem>>, %arg2: memref<24x128xbf16, #tpu.memory_space<vmem>>, %arg3: memref<1x128xf32, #tpu.memory_space<vmem>>, %arg4: memref<2x128xf32, #tpu.memory_space<vmem>>) attributes {dimension_semantics = [#tpu.dimension_semantics<parallel>], iteration_bounds = array<i64: 1>, scalar_prefetch = 0 : i64, scratch_operands = 0 : i64, tpu.core_type = #tpu.core_type<tc>, window_params = [{transform_indices = @transform_0, window_bounds = array<i64: 32, 24>}, {pipeline_mode = #tpu.pipeline_mode<synchronous>, transform_indices = @transform_1, window_bounds = array<i64: 24, 128>}, {pipeline_mode = #tpu.pipeline_mode<synchronous>, transform_indices = @transform_2, window_bounds = array<i64: 1, 128>}, {transform_indices = @transform_3, window_bounds = array<i64: 2, 128>}]} {
    %c0 = arith.constant 0 : index
    %c0_0 = arith.constant 0 : index
    %0 = vector.load %arg1[%c0, %c0_0] : memref<32x24xbf16, #tpu.memory_space<vmem>>, vector<32x24xbf16>
    %c0_1 = arith.constant 0 : index
    %c0_2 = arith.constant 0 : index
    %1 = vector.load %arg2[%c0_1, %c0_2] : memref<24x128xbf16, #tpu.memory_space<vmem>>, vector<24x128xbf16>
    %cst = arith.constant dense<0.000000e+00> : vector<32x128xf32>
    %2 = tpu.matmul %0, %1, %cst {dimension_numbers = #tpu.dot_dimension_numbers<[1], [0], [0], [1], [0, 0, 1, 1], [], []>} : vector<32x24xbf16>, vector<24x128xbf16>, vector<32x128xf32> -> vector<32x128xf32>
    %3 = vector.shape_cast %2 : vector<32x128xf32> to vector<2x16x128xf32>
    %cst_3 = arith.constant dense<0xFF800000> : vector<2x128xf32>
    %4 = vector.multi_reduction <maximumf>, %3, %cst_3 [1] : vector<2x16x128xf32> to vector<2x128xf32>
    %c0_4 = arith.constant 0 : index
    %c0_5 = arith.constant 0 : index
    %5 = vector.load %arg3[%c0_4, %c0_5] : memref<1x128xf32, #tpu.memory_space<vmem>>, vector<1x128xf32>
    %6 = vector.broadcast %5 : vector<1x128xf32> to vector<2x128xf32>
    %7 = arith.addf %4, %6 : vector<2x128xf32>
    %cst_6 = arith.constant 0.000000e+00 : f32
    %8 = vector.broadcast %cst_6 : f32 to vector<2x128xf32>
    %9 = arith.maximumf %7, %8 : vector<2x128xf32>
    %c0_7 = arith.constant 0 : index
    %c0_8 = arith.constant 0 : index
    %10 = vector.load %arg4[%c0_7, %c0_8] : memref<2x128xf32, #tpu.memory_space<vmem>>, vector<2x128xf32>
    tpu.vector_store %arg4[%c0_7, %c0_8], %9 {strides = array<i32>} : memref<2x128xf32, #tpu.memory_space<vmem>>, vector<2x128xf32>,
    return
  }
  func.func @transform_0(%arg0: i32) -> (i32, i32) {
    %c0_i32 = arith.constant 0 : i32
    %c0_i32_0 = arith.constant 0 : i32
    return %arg0, %c0_i32 : i32, i32
  }
  func.func @transform_1(%arg0: i32) -> (i32, i32) {
    %c0_i32 = arith.constant 0 : i32
    %c0_i32_0 = arith.constant 0 : i32
    %c0_i32_1 = arith.constant 0 : i32
    return %c0_i32, %c0_i32_0 : i32, i32
  }
  func.func @transform_2(%arg0: i32) -> (i32, i32) {
    %c0_i32 = arith.constant 0 : i32
    %c0_i32_0 = arith.constant 0 : i32
    %c0_i32_1 = arith.constant 0 : i32
    return %c0_i32, %c0_i32_0 : i32, i32
  }
  func.func @transform_3(%arg0: i32) -> (i32, i32) {
    %c0_i32 = arith.constant 0 : i32
    %c0_i32_0 = arith.constant 0 : i32
    return %arg0, %c0_i32 : i32, i32
  }
}

</mosaic_0001>

<bundles_post_ra>
// kernel: tpu_custom_call.1
= control target key start
LH: loop header
LB: loop body
LE: loop exit
PB: predicated region body
PF: predicated region fallthrough
CT: control target
= control target key end

     0   :  { %vm49_vm0 = vcmask 1043456   ;;  %vm42_vm1 = vcmask 195584   ;;  %s234_s0 = inlined_call_operand.vmem [shape: bf16[32,24], index: 0, kind: input, shape index: {}]   ;;  %s235_s1 = inlined_call_operand.vmem [shape: bf16[24,128], index: 1, kind: input, shape index: {}]   ;;  %s236_s2 = inlined_call_operand.vmem [shape: f32[1,128], index: 2, kind: input, shape index: {}]   ;;  %s237_s3 = inlined_call_operand.hbm [shape: f32[2,128], index: 3, kind: output, shape index: {}]  }
   0x1   :  { %v169_v0 = vld [vmem:[%s235_s1 + $0x8] ss:$0 sps:$4 sm:$0xff]   ;;  %v170_v1 = vld [vmem:[%s235_s1] sm:$0xff]  }
   0x2   :  { %167 = vmatprep.subr.msk.bf16.mxu0 %vm49_vm0, %v169_v0  ;;  %v51_v2 = vsel %vm49_vm0, %v169_v0, 0  ;;  %v171_v3 = vld [vmem:[%s234_s0] sm:$0xff]  }
   0x3   :  { %160 = vmatpush3.bf16.msra.mxu0 %v51_v2 }
   0x4   :  { %8 = vsyncpa [#allocation3], 0  ;;  %161 = vmatprep.subr.bf16.mxu0 %v170_v1  ;;  %163 = vmatprep.mubr.msk.bf16.mxu0 %vm42_vm1, %v171_v3  ;;  %v172_v4 = vld [vmem:[%s234_s0 + $0x8] sm:$0xff]   ;;  %v154_v20 = vld [vmem:[%s236_s2] ss:$0 sm:$0xff]  ;;  %s195_s0 = smov [#allocation2]  }
   0x5   :  { %s140_s21 = sshll.u32 %s195_s0, 4  ;;  %vm130_vm2 = vcmask 1041409   ;;  %s141_s21 = int_to_ptr.vmem [resolvable:$true] %s140_s21 }
   0x6   :  { %s173_s22 = scalar_lea.vmem %s141_s21, 32  ;;  %p178_p1 = scmp.lt.s32.totalorder %s141_s21, %s141_s21 }
   0x7   :  { %162 = vmatpush3.bf16.msra.mxu0 %v170_v1  ;;  %p174_p0 = scmp.ne.s32.totalorder %s141_s21, %s173_s22  ;;  %p179_p2 = scmp.lt.s32.totalorder %s173_s22, %s173_s22 }
   0x9   :  { %p180_p3 = por %p179_p2, %p178_p1 }
   0xa   :  { %164 = vmatmul.mubr.msk.bf16.vlgmr.msra.gmra.mxu0 %vm42_vm1, %v172_v4 }
   0xb   :  { %p181_p4 = pnand %p180_p3, %p174_p0 }
  0xca   :  { %v165_v5 = vpop.f32.mrf.mxu0 }
  0xcc   :  { %v87_v6 = vpop.f32.mrf.mxu0 }
  0xce   :  { %v166_v7 = vpop.f32.mrf.mxu0 }
  0xcf   :  { %v109_v8 = vmax.f32 %v165_v5, %v166_v7 }
  0xd0   :  { %v90_v9 = vpop.f32.mrf.mxu0 }
  0xd1   :  { %v110_v10 = vrot.slane %v109_v8, 4  ;;  %v102_v11 = vmax.f32 %v87_v6, %v90_v9 }
  0xd3   :  { %v111_v12 = vmax.f32 %v109_v8, %v110_v10  ;;  %v103_v13 = vrot.slane %v102_v11, 4 }
  0xd5   :  { %v112_v14 = vrot.slane %v111_v12, 2  ;;  %v104_v15 = vmax.f32 %v102_v11, %v103_v13 }
  0xd7   :  { %v113_v16 = vmax.f32 %v111_v12, %v112_v14  ;;  %v105_v17 = vrot.slane %v104_v15, 2 }
  0xd9   :  { %v114_v18 = vrot.slane %v113_v16, 1  ;;  %v106_v19 = vmax.f32 %v104_v15, %v105_v17 }
  0xdb   :  { %v115_v21 = vmax.f32 %v113_v16, %v114_v18  ;;  %v107_v22 = vrot.slane %v106_v19, 1 }
  0xdd   :  { %v108_v23 = vmax.f32 %v106_v19, %v107_v22  ;;  %v124_v24 = vadd.f32 %v154_v20, %v115_v21 }
  0xdf   :  { %v123_v25 = vadd.f32 %v154_v20, %v108_v23  ;;  %v126_v26 = vmax.f32 %v124_v24, 0.0 }
  0xe1   :  { %v125_v27 = vmax.f32 %v123_v25, 0.0  ;;  %v129_v28 = vrot.slane %v126_v26, 7 }
  0xe3   :  { %v131_v29 = vsel %vm130_vm2, %v129_v28, %v125_v27 }
  0xe4   :  { %133 = vst [vmem:[#allocation2] sm:$0x3] %v131_v29 }
  0xe5   :  { %184 = shalt.err (!%p181_p4)
}
  0xe6   :  { %143 = dma.vmem_to_hbm [thread:$0]  %s141_s21, 32, %s237_s3, [#allocation3]  }
  0xe7   :  { %193 = dma.done.wait [#allocation3], 32  }
  0xe8   :  { %194 = vsyncadd [#allocation3], 4294967264 }
  0xe9   :  { %147 = vsyncpa [#allocation3], 1 }

</bundles_post_ra>
